<compile_context>
chip_gen: v7x
topology: tpu7x:2x2x1
jax: 0.10.0
libtpu: 0.0.40
codegen_flags: <defaults>
</compile_context>

<pallas_src>
import math

import jax
import jax.numpy as jnp
from jax.experimental import pallas as pl
from jax.experimental.pallas import tpu as pltpu

IN_FEATURES = 784
OUT_FEATURES = 10
MAX_BATCH_TILE = 2048   # ~18 MB VMEM with double-buffered x tiles; safe on v5e/v6e/v7x
SPLIT_THRESHOLD = 256   # above this, use >=2 grid steps so v7x's 2nd TensorCore gets work


def _round_up(n, m):
    return ((n + m - 1) // m) * m


def _linear_kernel(x_ref, w_ref, b_ref, o_ref):
    # (TB, 784) @ (784, 10) on the MXU, f32 accumulate; bias add on the VPU.
    acc = jnp.dot(x_ref[...], w_ref[...], preferred_element_type=jnp.float32)
    o_ref[...] = (acc + b_ref[...]).astype(o_ref.dtype)
    # TODO(synk): if this ever feeds cross-entropy, fuse log-softmax/NLL here
    # (EUP is idle and the output write shrinks further); the reference
    # module's forward() is just the Linear, so semantics are kept as-is.


def _choose_batch_tile(batch):
    """Static batch-tile selection.

    - batch <= 256:          single tile (per-step overhead dominates).
    - 256 < batch <= 2048:   two tiles -> both v7x TensorCores get work.
    - larger:                cap at MAX_BATCH_TILE; ragged remainder tile is
                             handled by the cdiv grid (no padding of x).
    """
    if batch <= SPLIT_THRESHOLD:
        return max(8, _round_up(batch, 8))
    if batch <= MAX_BATCH_TILE:
        return _round_up(-(-batch // 2), 8)
    return MAX_BATCH_TILE


def prepare_params(weight, bias):
    """One-time param prep (do NOT call per forward).

    weight: (10, 784) nn.Linear layout, bias: (10,).
    Returns weight transposed to (784, 10) and bias as (1, 10).  No lane
    padding: the kernel writes the 10-wide output directly.
    """
    w_t = jnp.asarray(weight, jnp.float32).T            # hoisted transpose
    b_row = jnp.asarray(bias, jnp.float32).reshape(1, OUT_FEATURES)
    return w_t, b_row


def mnist_logistic_forward(xb, w_t, b_row):
    """xb: (B, 784) f32; w_t: (784, 10); b_row: (1, 10).

    Returns (B, 10) logits, matching nn.Linear(784, 10)(xb).
    (xb may also be bf16 for ~2x HBM-bandwidth savings; accumulation stays f32,
    but numerics then differ slightly from the f32 reference.)
    """
    B = xb.shape[0]
    TB = _choose_batch_tile(B)
    grid = (pl.cdiv(B, TB),)  # ragged last tile handled by Pallas; no jnp.pad

    itemsize = jnp.dtype(xb.dtype).itemsize
    cost = pl.CostEstimate(
        flops=2 * B * IN_FEATURES * OUT_FEATURES,
        transcendentals=0,
        bytes_accessed=(B * IN_FEATURES * itemsize       # x read
                        + IN_FEATURES * OUT_FEATURES * 4  # weight read (once)
                        + OUT_FEATURES * 4                # bias read
                        + B * OUT_FEATURES * 4),          # output write
    )

    return pl.pallas_call(
        _linear_kernel,
        out_shape=jax.ShapeDtypeStruct((B, OUT_FEATURES), jnp.float32),
        grid_spec=pltpu.PrefetchScalarGridSpec(
            num_scalar_prefetch=0,
            grid=grid,
            in_specs=[
                pl.BlockSpec((TB, IN_FEATURES), lambda i: (i, 0)),            # x tile
                pl.BlockSpec((IN_FEATURES, OUT_FEATURES), lambda i: (0, 0)),  # weight (resident)
                pl.BlockSpec((1, OUT_FEATURES), lambda i: (0, 0)),            # bias (resident)
            ],
            # 10-wide out block is legal (== full output dim); avoids the padded
            # slab + slice HBM round trip at the cost of a masked vst.
            out_specs=pl.BlockSpec((TB, OUT_FEATURES), lambda i: (i, 0)),
        ),
        compiler_params=pltpu.CompilerParams(
            dimension_semantics=("parallel",),   # batch tiles are independent
            vmem_limit_bytes=40 * 1024 * 1024,   # TB=2048 uses ~18 MB; clears v5e's
                                                 # 16 MiB default, << v7x's 64 MiB phys.
        ),
        cost_estimate=cost,
    )(xb, w_t, b_row)
    # Note: weight/bias index maps are constant, so they are only fetched on the
    # first grid step.  Single-buffering them (pl.Buffered(1)) would save ~0.4 MB
    # of VMEM but isn't needed at this budget, so it is skipped for portability.


def init_params(key):
    """Deterministic init matching nn.Linear(784, 10) shapes / init scheme."""
    k_w, k_b = jax.random.split(key)
    bound = 1.0 / math.sqrt(IN_FEATURES)
    weight = jax.random.uniform(
        k_w, (OUT_FEATURES, IN_FEATURES), jnp.float32, -bound, bound
    )
    bias = jax.random.uniform(k_b, (OUT_FEATURES,), jnp.float32, -bound, bound)
    return weight, bias


if __name__ == "__main__":
    key = jax.random.PRNGKey(0)
    k_x, k_p = jax.random.split(key)

    weight, bias = init_params(k_p)
    w_t, b_row = prepare_params(weight, bias)    # one-time layout prep

    # bs=64 matches the reference script; bs=300 exercises the 2-step
    # "parallel" grid with a ragged last tile (no jnp.pad path).
    for bs_test in (64, 300):
        xb = jax.random.uniform(
            jax.random.fold_in(k_x, bs_test), (bs_test, IN_FEATURES), jnp.float32
        )
        out = jax.block_until_ready(mnist_logistic_forward(xb, w_t, b_row))

        # Sanity check against plain-JAX reference (original PyTorch semantics).
        ref = xb @ weight.T + bias
        assert out.shape == (bs_test, OUT_FEATURES)
        assert jnp.allclose(out, ref, atol=1e-4, rtol=1e-4)

    print("KERNEL_OK")
</pallas_src>

<mosaic_0001>
module attributes {stable_mosaic.version = 11 : i64} {
  func.func @_linear_kernel(%arg0: i32, %arg1: memref<64x784xf32, #tpu.memory_space<vmem>>, %arg2: memref<784x10xf32, #tpu.memory_space<vmem>>, %arg3: memref<1x10xf32, #tpu.memory_space<vmem>>, %arg4: memref<64x10xf32, #tpu.memory_space<vmem>>) attributes {dimension_semantics = [#tpu.dimension_semantics<parallel>], iteration_bounds = array<i64: 1>, scalar_prefetch = 0 : i64, scratch_operands = 0 : i64, tpu.core_type = #tpu.core_type<tc>, window_params = [{transform_indices = @transform_0, window_bounds = array<i64: 64, 784>}, {pipeline_mode = #tpu.pipeline_mode<synchronous>, transform_indices = @transform_1, window_bounds = array<i64: 784, 10>}, {pipeline_mode = #tpu.pipeline_mode<synchronous>, transform_indices = @transform_2, window_bounds = array<i64: 1, 10>}, {transform_indices = @transform_3, window_bounds = array<i64: 64, 10>}]} {
    %c0 = arith.constant 0 : index
    %c0_0 = arith.constant 0 : index
    %0 = vector.load %arg1[%c0, %c0_0] : memref<64x784xf32, #tpu.memory_space<vmem>>, vector<64x784xf32>
    %c0_1 = arith.constant 0 : index
    %c0_2 = arith.constant 0 : index
    %1 = vector.load %arg2[%c0_1, %c0_2] : memref<784x10xf32, #tpu.memory_space<vmem>>, vector<784x10xf32>
    %cst = arith.constant dense<0.000000e+00> : vector<64x10xf32>
    %2 = tpu.matmul %0, %1, %cst {dimension_numbers = #tpu.dot_dimension_numbers<[1], [0], [0], [1], [0, 0, 1, 1], [], []>} : vector<64x784xf32>, vector<784x10xf32>, vector<64x10xf32> -> vector<64x10xf32>
    %c0_3 = arith.constant 0 : index
    %c0_4 = arith.constant 0 : index
    %3 = vector.load %arg3[%c0_3, %c0_4] : memref<1x10xf32, #tpu.memory_space<vmem>>, vector<1x10xf32>
    %4 = vector.broadcast %3 : vector<1x10xf32> to vector<64x10xf32>
    %5 = arith.addf %2, %4 : vector<64x10xf32>
    %c0_5 = arith.constant 0 : index
    %c0_6 = arith.constant 0 : index
    %6 = vector.load %arg4[%c0_5, %c0_6] : memref<64x10xf32, #tpu.memory_space<vmem>>, vector<64x10xf32>
    tpu.vector_store %arg4[%c0_5, %c0_6], %5 {strides = array<i32>} : memref<64x10xf32, #tpu.memory_space<vmem>>, vector<64x10xf32>,
    return
  }
  func.func @transform_0(%arg0: i32) -> (i32, i32) {
    %c0_i32 = arith.constant 0 : i32
    %c0_i32_0 = arith.constant 0 : i32
    return %arg0, %c0_i32 : i32, i32
  }
  func.func @transform_1(%arg0: i32) -> (i32, i32) {
    %c0_i32 = arith.constant 0 : i32
    %c0_i32_0 = arith.constant 0 : i32
    %c0_i32_1 = arith.constant 0 : i32
    return %c0_i32, %c0_i32_0 : i32, i32
  }
  func.func @transform_2(%arg0: i32) -> (i32, i32) {
    %c0_i32 = arith.constant 0 : i32
    %c0_i32_0 = arith.constant 0 : i32
    %c0_i32_1 = arith.constant 0 : i32
    return %c0_i32, %c0_i32_0 : i32, i32
  }
  func.func @transform_3(%arg0: i32) -> (i32, i32) {
    %c0_i32 = arith.constant 0 : i32
    %c0_i32_0 = arith.constant 0 : i32
    return %arg0, %c0_i32 : i32, i32
  }
}

</mosaic_0001>

<bundles_post_ra>
// kernel: tpu_custom_call.1
= control target key start
LH: loop header
LB: loop body
LE: loop exit
PB: predicated region body
PF: predicated region fallthrough
CT: control target
= control target key end

     0   :  { %vm175_vm0 = vcmask 130048   ;;  %vm620_vm1 = vcmask 80896   ;;  %s1489_s1 = inlined_call_operand.vmem [shape: f32[784,10], index: 1, kind: input, shape index: {}]   ;;  %s1490_s0 = inlined_call_operand.vmem [shape: f32[64,784], index: 0, kind: input, shape index: {}]   ;;  %s1491_s2 = inlined_call_operand.vmem [shape: f32[1,10], index: 2, kind: input, shape index: {}]   ;;  %s1492_s3 = inlined_call_operand.vmem [shape: f32[64,10], index: 3, kind: output, shape index: {}]  }
   0x1   :  { %v86_v0 = vld [vmem:[%s1489_s1 + $0x80] sm:$0xff]  ;;  %v87_v1 = vld [vmem:[%s1489_s1 + $0x88] sm:$0xff]  ;;  %v88_v11 = vld [vmem:[%s1489_s1 + $0x90] sm:$0xff] }
   0x2   :  { %v118_v2 = vld [vmem:[%s1489_s1 + $0x180] sm:$0xff]  ;;  %v836_v3 = vpack.c.bf16 %v87_v1, %v86_v0  ;;  %v119_v4 = vld [vmem:[%s1489_s1 + $0x188] sm:$0xff]  ;;  %v89_v13 = vld [vmem:[%s1489_s1 + $0x98] sm:$0xff] }
   0x3   :  { %v70_v5 = vld [vmem:[%s1489_s1] sm:$0xff]  ;;  %v71_v6 = vld [vmem:[%s1489_s1 + $0x8] sm:$0xff]  ;;  %v868_v7 = vpack.c.bf16 %v119_v4, %v118_v2  ;;  %v120_v14 = vld [vmem:[%s1489_s1 + $0x190] sm:$0xff]  ;;  %v840_v16 = vpack.c.bf16 %v89_v13, %v88_v11 }
   0x4   :  { %v838_v8 = vpack.c.bf16 %v71_v6, %v70_v5  ;;  %v102_v9 = vld [vmem:[%s1489_s1 + $0x100] sm:$0xff]  ;;  %v103_v10 = vld [vmem:[%s1489_s1 + $0x108] sm:$0xff]  ;;  %837 = vmatprep.subr.bf16.mxu0 %v836_v3  ;;  %v121_v15 = vld [vmem:[%s1489_s1 + $0x198] sm:$0xff] }
   0x5   :  { %v870_v12 = vpack.c.bf16 %v103_v10, %v102_v9  ;;  %869 = vmatprep.subr.bf16.mxu1 %v868_v7  ;;  %v872_v17 = vpack.c.bf16 %v121_v15, %v120_v14  ;;  %v72_v18 = vld [vmem:[%s1489_s1 + $0x10] sm:$0xff]  ;;  %v73_v19 = vld [vmem:[%s1489_s1 + $0x18] sm:$0xff]  ;;  %v90_v23 = vld [vmem:[%s1489_s1 + $0xa0] sm:$0xff] }
   0x6   :  { %839 = vmatpush3.bf16.msra.mxu0 %v838_v8  ;;  %v104_v20 = vld [vmem:[%s1489_s1 + $0x110] sm:$0xff]  ;;  %v842_v21 = vpack.c.bf16 %v73_v19, %v72_v18  ;;  %v105_v22 = vld [vmem:[%s1489_s1 + $0x118] sm:$0xff]  ;;  %v91_v24 = vld [vmem:[%s1489_s1 + $0xa8] sm:$0xff] }
   0x7   :  { %871 = vmatpush3.bf16.msra.mxu1 %v870_v12  ;;  %841 = vmatprep.subr.bf16.mxu0 %v840_v16  ;;  %v874_v25 = vpack.c.bf16 %v105_v22, %v104_v20  ;;  %v844_v26 = vpack.c.bf16 %v91_v24, %v90_v23  ;;  %v122_v27 = vld [vmem:[%s1489_s1 + $0x1a0] sm:$0xff]  ;;  %v123_v28 = vld [vmem:[%s1489_s1 + $0x1a8] sm:$0xff]  ;;  %v92_v35 = vld [vmem:[%s1489_s1 + $0xb0] sm:$0xff] }
   0x8   :  { %873 = vmatprep.subr.bf16.mxu1 %v872_v17  ;;  %v74_v29 = vld [vmem:[%s1489_s1 + $0x20] sm:$0xff]  ;;  %v876_v30 = vpack.c.bf16 %v123_v28, %v122_v27  ;;  %v75_v31 = vld [vmem:[%s1489_s1 + $0x28] sm:$0xff]  ;;  %v93_v36 = vld [vmem:[%s1489_s1 + $0xb8] sm:$0xff] }
   0x9   :  { %v106_v32 = vld [vmem:[%s1489_s1 + $0x120] sm:$0xff]  ;;  %v107_v33 = vld [vmem:[%s1489_s1 + $0x128] sm:$0xff]  ;;  %v846_v34 = vpack.c.bf16 %v75_v31, %v74_v29  ;;  %v124_v37 = vld [vmem:[%s1489_s1 + $0x1b0] sm:$0xff]  ;;  %v848_v39 = vpack.c.bf16 %v93_v36, %v92_v35 }
   0xa   :  { %843 = vmatpush3.bf16.msra.mxu0 %v842_v21  ;;  %v878_v38 = vpack.c.bf16 %v107_v33, %v106_v32  ;;  %v125_v40 = vld [vmem:[%s1489_s1 + $0x1b8] sm:$0xff]  ;;  %v76_v41 = vld [vmem:[%s1489_s1 + $0x30] sm:$0xff]  ;;  %v94_v46 = vld [vmem:[%s1489_s1 + $0xc0] sm:$0xff] }
   0xb   :  { %875 = vmatpush3.bf16.msra.mxu1 %v874_v25  ;;  %845 = vmatprep.subr.bf16.mxu0 %v844_v26  ;;  %v77_v42 = vld [vmem:[%s1489_s1 + $0x38] sm:$0xff]  ;;  %v880_v43 = vpack.c.bf16 %v125_v40, %v124_v37  ;;  %v108_v44 = vld [vmem:[%s1489_s1 + $0x130] sm:$0xff]  ;;  %v95_v47 = vld [vmem:[%s1489_s1 + $0xc8] sm:$0xff] }
   0xc   :  { %877 = vmatprep.subr.bf16.mxu1 %v876_v30  ;;  %v109_v45 = vld [vmem:[%s1489_s1 + $0x138] sm:$0xff]  ;;  %v126_v48 = vld [vmem:[%s1489_s1 + $0x1c0] sm:$0xff]  ;;  %v127_v49 = vld [vmem:[%s1489_s1 + $0x1c8] sm:$0xff]  ;;  %v850_v50 = vpack.c.bf16 %v77_v42, %v76_v41  ;;  %v852_v52 = vpack.c.bf16 %v95_v47, %v94_v46 }
   0xd   :  { %v882_v51 = vpack.c.bf16 %v109_v45, %v108_v44  ;;  %v78_v53 = vld [vmem:[%s1489_s1 + $0x40] sm:$0xff]  ;;  %v79_v54 = vld [vmem:[%s1489_s1 + $0x48] sm:$0xff]  ;;  %v884_v56 = vpack.c.bf16 %v127_v49, %v126_v48  ;;  %v96_v58 = vld [vmem:[%s1489_s1 + $0xd0] sm:$0xff] }
   0xe   :  { %847 = vmatpush3.bf16.msra.mxu0 %v846_v34  ;;  %v110_v55 = vld [vmem:[%s1489_s1 + $0x140] sm:$0xff]  ;;  %v111_v57 = vld [vmem:[%s1489_s1 + $0x148] sm:$0xff]  ;;  %v97_v59 = vld [vmem:[%s1489_s1 + $0xd8] sm:$0xff]  ;;  %v854_v62 = vpack.c.bf16 %v79_v54, %v78_v53 }
   0xf   :  { %879 = vmatpush3.bf16.msra.mxu1 %v878_v38  ;;  %849 = vmatprep.subr.bf16.mxu0 %v848_v39  ;;  %v128_v60 = vld [vmem:[%s1489_s1 + $0x1d0] sm:$0xff]  ;;  %v129_v61 = vld [vmem:[%s1489_s1 + $0x1d8] sm:$0xff]  ;;  %v886_v63 = vpack.c.bf16 %v111_v57, %v110_v55  ;;  %v856_v0 = vpack.c.bf16 %v97_v59, %v96_v58  ;;  %v98_v6 = vld [vmem:[%s1489_s1 + $0xe0] sm:$0xff] }
  0x10   :  { %881 = vmatprep.subr.bf16.mxu1 %v880_v43  ;;  %v80_v1 = vld [vmem:[%s1489_s1 + $0x50] sm:$0xff]  ;;  %v81_v2 = vld [vmem:[%s1489_s1 + $0x58] sm:$0xff]  ;;  %v888_v4 = vpack.c.bf16 %v129_v61, %v128_v60  ;;  %v99_v7 = vld [vmem:[%s1489_s1 + $0xe8] sm:$0xff] }
  0x11   :  { %v112_v3 = vld [vmem:[%s1489_s1 + $0x150] sm:$0xff]  ;;  %v113_v5 = vld [vmem:[%s1489_s1 + $0x158] sm:$0xff]  ;;  %v130_v8 = vld [vmem:[%s1489_s1 + $0x1e0] sm:$0xff]  ;;  %v858_v10 = vpack.c.bf16 %v81_v2, %v80_v1  ;;  %v860_v14 = vpack.c.bf16 %v99_v7, %v98_v6 }
  0x12   :  { %851 = vmatpush3.bf16.msra.mxu0 %v850_v50  ;;  %v131_v9 = vld [vmem:[%s1489_s1 + $0x1e8] sm:$0xff]  ;;  %v82_v11 = vld [vmem:[%s1489_s1 + $0x60] sm:$0xff]  ;;  %v890_v13 = vpack.c.bf16 %v113_v5, %v112_v3  ;;  %v17_v17 = vld [vmem:[%s1490_s0 + $0x18] sm:$0xff] }
  0x13   :  { %883 = vmatpush3.bf16.msra.mxu1 %v882_v51  ;;  %853 = vmatprep.subr.bf16.mxu0 %v852_v52  ;;  %v83_v12 = vld [vmem:[%s1489_s1 + $0x68] sm:$0xff]  ;;  %v114_v15 = vld [vmem:[%s1489_s1 + $0x160] sm:$0xff]  ;;  %v892_v18 = vpack.c.bf16 %v131_v9, %v130_v8  ;;  %v100_v20 = vld [vmem:[%s1489_s1 + $0xf0] sm:$0xff] }
  0x14   :  { %885 = vmatprep.subr.bf16.mxu1 %v884_v56  ;;  %v15_v16 = vld [vmem:[%s1490_s0 + $0x8] sm:$0xff]  ;;  %v101_v21 = vld [vmem:[%s1489_s1 + $0xf8] sm:$0xff]  ;;  %v132_v22 = vld [vmem:[%s1489_s1 + $0x1f0] sm:$0xff]  ;;  %369 = vmatprep.mubr.f32.mxu1 %v17_v17  ;;  %v862_v24 = vpack.c.bf16 %v83_v12, %v82_v11 }
  0x15   :  { %v115_v19 = vld [vmem:[%s1489_s1 + $0x168] sm:$0xff]  ;;  %264 = vmatprep.mubr.f32.mxu0 %v15_v16  ;;  %v133_v23 = vld [vmem:[%s1489_s1 + $0x1f8] sm:$0xff]  ;;  %v864_v26 = vpack.c.bf16 %v101_v21, %v100_v20  ;;  %v84_v27 = vld [vmem:[%s1489_s1 + $0x70] sm:$0xff] }
  0x16   :  { %855 = vmatpush3.bf16.msra.mxu0 %v854_v62  ;;  %v894_v25 = vpack.c.bf16 %v115_v19, %v114_v15  ;;  %v85_v28 = vld [vmem:[%s1489_s1 + $0x78] sm:$0xff]  ;;  %v116_v29 = vld [vmem:[%s1489_s1 + $0x170] sm:$0xff]  ;;  %v896_v30 = vpack.c.bf16 %v133_v23, %v132_v22  ;;  %v150_v32 = vld [vmem:[%s1489_s1 + $0x280] sm:$0xff] }
  0x17   :  { %887 = vmatpush3.bf16.msra.mxu1 %v886_v63  ;;  %857 = vmatprep.subr.bf16.mxu0 %v856_v0  ;;  %v117_v31 = vld [vmem:[%s1489_s1 + $0x178] sm:$0xff]  ;;  %v151_v33 = vld [vmem:[%s1489_s1 + $0x288] sm:$0xff]  ;;  %v866_v34 = vpack.c.bf16 %v85_v28, %v84_v27  ;;  %v134_v37 = vld [vmem:[%s1489_s1 + $0x200] sm:$0xff] }
  0x18   :  { %889 = vmatprep.subr.bf16.mxu1 %v888_v4  ;;  %v898_v35 = vpack.c.bf16 %v117_v31, %v116_v29  ;;  %v900_v36 = vpack.c.bf16 %v151_v33, %v150_v32  ;;  %v135_v38 = vld [vmem:[%s1489_s1 + $0x208] sm:$0xff]  ;;  %v152_v39 = vld [vmem:[%s1489_s1 + $0x290] sm:$0xff]  ;;  %v153_v40 = vld [vmem:[%s1489_s1 + $0x298] sm:$0xff] }
  0x19   :  { %v14_v41 = vld [vmem:[%s1490_s0] sm:$0xff]  ;;  %v902_v42 = vpack.c.bf16 %v135_v38, %v134_v37  ;;  %v16_v43 = vld [vmem:[%s1490_s0 + $0x10] sm:$0xff]  ;;  %v137_v45 = vld [vmem:[%s1489_s1 + $0x218] sm:$0xff]  ;;  %v904_v47 = vpack.c.bf16 %v153_v40, %v152_v39 }
  0x1a   :  { %859 = vmatpush3.bf16.msra.mxu0 %v858_v10  ;;  %v136_v44 = vld [vmem:[%s1489_s1 + $0x210] sm:$0xff]  ;;  %v22_v46 = vld [vmem:[%s1490_s0 + $0x40] sm:$0xff]  ;;  %v155_v50 = vld [vmem:[%s1489_s1 + $0x2a8] sm:$0xff] }
  0x1b   :  { %891 = vmatpush3.bf16.msra.mxu1 %v890_v13  ;;  %861 = vmatprep.subr.bf16.mxu0 %v860_v14  ;;  %v24_v48 = vld [vmem:[%s1490_s0 + $0x50] sm:$0xff]  ;;  %v154_v49 = vld [vmem:[%s1489_s1 + $0x2a0] sm:$0xff]  ;;  %v21_v51 = vld [vmem:[%s1490_s0 + $0x38] sm:$0xff]  ;;  %v906_v52 = vpack.c.bf16 %v137_v45, %v136_v44 }
  0x1c   :  { %893 = vmatprep.subr.bf16.mxu1 %v892_v18  ;;  %v23_v53 = vld [vmem:[%s1490_s0 + $0x48] sm:$0xff]  ;;  %v138_v54 = vld [vmem:[%s1489_s1 + $0x220] sm:$0xff]  ;;  %v29_v56 = vld [vmem:[%s1490_s0 + $0x78] sm:$0xff]  ;;  %v908_v57 = vpack.c.bf16 %v155_v50, %v154_v49 }
  0x1d   :  { %v139_v55 = vld [vmem:[%s1489_s1 + $0x228] sm:$0xff]  ;;  %v156_v59 = vld [vmem:[%s1489_s1 + $0x2b0] sm:$0xff]  ;;  %v157_v60 = vld [vmem:[%s1489_s1 + $0x2b8] sm:$0xff] }
  0x1e   :  { %863 = vmatpush3.bf16.msra.mxu0 %v862_v24  ;;  %v31_v58 = vld [vmem:[%s1490_s0 + $0x88] sm:$0xff]  ;;  %v28_v61 = vld [vmem:[%s1490_s0 + $0x70] sm:$0xff]  ;;  %v910_v62 = vpack.c.bf16 %v139_v55, %v138_v54  ;;  %v30_v63 = vld [vmem:[%s1490_s0 + $0x80] sm:$0xff]  ;;  %v912_v3 = vpack.c.bf16 %v157_v60, %v156_v59 }
  0x1f   :  { %895 = vmatpush3.bf16.msra.mxu1 %v894_v25  ;;  %865 = vmatprep.subr.bf16.mxu0 %v864_v26  ;;  %v140_v0 = vld [vmem:[%s1489_s1 + $0x230] sm:$0xff]  ;;  %v141_v1 = vld [vmem:[%s1489_s1 + $0x238] sm:$0xff]  ;;  %v38_v4 = vld [vmem:[%s1490_s0 + $0xc0] sm:$0xff] }
  0x20   :  { %897 = vmatprep.subr.bf16.mxu1 %v896_v30  ;;  %v36_v2 = vld [vmem:[%s1490_s0 + $0xb0] sm:$0xff]  ;;  %v158_v5 = vld [vmem:[%s1489_s1 + $0x2c0] sm:$0xff]  ;;  %v159_v6 = vld [vmem:[%s1489_s1 + $0x2c8] sm:$0xff]  ;;  %v914_v8 = vpack.c.bf16 %v141_v1, %v140_v0 }
  0x21   :  { %v35_v7 = vld [vmem:[%s1490_s0 + $0xa8] sm:$0xff]  ;;  %v37_v9 = vld [vmem:[%s1490_s0 + $0xb8] sm:$0xff]  ;;  %v142_v10 = vld [vmem:[%s1489_s1 + $0x240] sm:$0xff]  ;;  %v916_v13 = vpack.c.bf16 %v159_v6, %v158_v5 }
  0x22   :  { %867 = vmatpush3.bf16.msra.mxu0 %v866_v34  ;;  %v143_v11 = vld [vmem:[%s1489_s1 + $0x248] sm:$0xff]  ;;  %v45_v14 = vld [vmem:[%s1490_s0 + $0xf8] sm:$0xff]  ;;  %v160_v15 = vld [vmem:[%s1489_s1 + $0x2d0] sm:$0xff] }
  0x23   :  { %899 = vmatpush3.bf16.msra.mxu1 %v898_v35  ;;  %901 = vmatprep.subr.bf16.mxu0 %v900_v36  ;;  %v43_v12 = vld [vmem:[%s1490_s0 + $0xe8] sm:$0xff]  ;;  %v161_v16 = vld [vmem:[%s1489_s1 + $0x2d8] sm:$0xff]  ;;  %v42_v17 = vld [vmem:[%s1490_s0 + $0xe0] sm:$0xff]  ;;  %v918_v18 = vpack.c.bf16 %v143_v11, %v142_v10 }
  0x24   :  { %936 = vmatprep.subr.bf16.mxu1 %v900_v36  ;;  %v44_v19 = vld [vmem:[%s1490_s0 + $0xf0] sm:$0xff]  ;;  %v145_v21 = vld [vmem:[%s1489_s1 + $0x258] sm:$0xff]  ;;  %v50_v22 = vld [vmem:[%s1490_s0 + $0x120] sm:$0xff]  ;;  %v920_v23 = vpack.c.bf16 %v161_v16, %v160_v15 }
  0x25   :  { %265 = vmatmul.mubr.f32.vlgmr.msra.gmra.mrb[0].mxu0 %v14_v41  ;;  %v144_v20 = vld [vmem:[%s1489_s1 + $0x250] sm:$0xff]  ;;  %v162_v25 = vld [vmem:[%s1489_s1 + $0x2e0] sm:$0xff]  ;;  %v163_v26 = vld [vmem:[%s1489_s1 + $0x2e8] sm:$0xff] }
  0x26   :  { %370 = vmatmul.mubr.f32.vlgmr.msra.gmra.mrb[0].mxu1 %v16_v43  ;;  %903 = vmatpush3.bf16.msra.mxu0 %v902_v42  ;;  %v52_v24 = vld [vmem:[%s1490_s0 + $0x130] sm:$0xff]  ;;  %v49_v27 = vld [vmem:[%s1490_s0 + $0x118] sm:$0xff]  ;;  %v922_v28 = vpack.c.bf16 %v145_v21, %v144_v20  ;;  %v51_v29 = vld [vmem:[%s1490_s0 + $0x128] sm:$0xff]  ;;  %v924_v33 = vpack.c.bf16 %v163_v26, %v162_v25 }
  0x27   :  { %944 = vmatpush3.bf16.msra.mxu1 %v902_v42  ;;  %269 = vmatprep.mubr.f32.mxu0 %v22_v46  ;;  %v146_v30 = vld [vmem:[%s1489_s1 + $0x260] sm:$0xff]  ;;  %v147_v31 = vld [vmem:[%s1489_s1 + $0x268] sm:$0xff]  ;;  %v57_v32 = vld [vmem:[%s1490_s0 + $0x158] sm:$0xff] }
  0x28   :  { %374 = vmatprep.mubr.f32.mxu1 %v24_v48  ;;  %905 = vmatprep.subr.bf16.mxu0 %v904_v47  ;;  %v59_v34 = vld [vmem:[%s1490_s0 + $0x168] sm:$0xff]  ;;  %v164_v35 = vld [vmem:[%s1489_s1 + $0x2f0] sm:$0xff]  ;;  %v165_v36 = vld [vmem:[%s1489_s1 + $0x2f8] sm:$0xff]  ;;  %v926_v38 = vpack.c.bf16 %v147_v31, %v146_v30 }
  0x29   :  { %270 = vmatmul.mubr.f32.gmra.mrb[2].mxu0 %v21_v51  ;;  %937 = vmatprep.subr.bf16.mxu1 %v904_v47  ;;  %v56_v37 = vld [vmem:[%s1490_s0 + $0x150] sm:$0xff]  ;;  %v58_v39 = vld [vmem:[%s1490_s0 + $0x160] sm:$0xff]  ;;  %v149_v41 = vld [vmem:[%s1489_s1 + $0x278] sm:$0xff]  ;;  %v928_v43 = vpack.c.bf16 %v165_v36, %v164_v35 }
  0x2a   :  { %375 = vmatmul.mubr.f32.gmra.mrb[2].mxu1 %v23_v53  ;;  %907 = vmatpush3.bf16.msra.mxu0 %v906_v52  ;;  %v148_v40 = vld [vmem:[%s1489_s1 + $0x270] sm:$0xff]  ;;  %v66_v44 = vld [vmem:[%s1490_s0 + $0x1a0] sm:$0xff]  ;;  %v167_v46 = vld [vmem:[%s1489_s1 + $0x308] sm:$0xff] }
  0x2b   :  { %945 = vmatpush3.bf16.msra.mxu1 %v906_v52  ;;  %274 = vmatprep.mubr.f32.mxu0 %v29_v56  ;;  %v64_v42 = vld [vmem:[%s1490_s0 + $0x190] sm:$0xff]  ;;  %v166_v45 = vld [vmem:[%s1489_s1 + $0x300] sm:$0xff]  ;;  %v63_v47 = vld [vmem:[%s1490_s0 + $0x188] sm:$0xff]  ;;  %v930_v48 = vpack.c.bf16 %v149_v41, %v148_v40 }
  0x2c   :  { %379 = vmatprep.mubr.f32.mxu1 %v31_v58  ;;  %909 = vmatprep.subr.bf16.mxu0 %v908_v57  ;;  %v65_v49 = vld [vmem:[%s1490_s0 + $0x198] sm:$0xff]  ;;  %v19_v50 = vld [vmem:[%s1490_s0 + $0x28] sm:$0xff]  ;;  %v932_v51 = vpack.c.bf16 %v167_v46, %v166_v45  ;;  %v18_v53 = vld [vmem:[%s1490_s0 + $0x20] sm:$0xff] }
  0x2d   :  { %275 = vmatmul.mubr.f32.gmra.mrb[4].mxu0 %v28_v61  ;;  %938 = vmatprep.subr.bf16.mxu1 %v908_v57  ;;  %v61_v52 = vld [vmem:[%s1490_s0 + $0x178] sm:$0xff]  ;;  %v60_v54 = vld [vmem:[%s1490_s0 + $0x170] sm:$0xff]  ;;  %v26_v55 = vld [vmem:[%s1490_s0 + $0x60] sm:$0xff] }
  0x2e   :  { %380 = vmatmul.mubr.f32.gmra.mrb[4].mxu1 %v30_v63  ;;  %911 = vmatpush3.bf16.msra.mxu0 %v910_v62  ;;  %v68_v56 = vld [vmem:[%s1490_s0 + $0x1b0] sm:$0xff]  ;;  %v25_v57 = vld [vmem:[%s1490_s0 + $0x58] sm:$0xff]  ;;  %v67_v58 = vld [vmem:[%s1490_s0 + $0x1a8] sm:$0xff] }
  0x2f   :  { %946 = vmatpush3.bf16.msra.mxu1 %v910_v62  ;;  %279 = vmatprep.mubr.f32.mxu0 %v36_v2  ;;  %v33_v59 = vld [vmem:[%s1490_s0 + $0x98] sm:$0xff]  ;;  %v20_v60 = vld [vmem:[%s1490_s0 + $0x30] sm:$0xff]  ;;  %v27_v62 = vld [vmem:[%s1490_s0 + $0x68] sm:$0xff] }
  0x30   :  { %384 = vmatprep.mubr.f32.mxu1 %v38_v4  ;;  %913 = vmatprep.subr.bf16.mxu0 %v912_v3  ;;  %v32_v61 = vld [vmem:[%s1490_s0 + $0x90] sm:$0xff]  ;;  %v34_v0 = vld [vmem:[%s1490_s0 + $0xa0] sm:$0xff]  ;;  %v39_v1 = vld [vmem:[%s1490_s0 + $0xc8] sm:$0xff] }
  0x31   :  { %280 = vmatmul.mubr.f32.gmra.mrb[6].mxu0 %v35_v7  ;;  %939 = vmatprep.subr.bf16.mxu1 %v912_v3  ;;  %v40_v63 = vld [vmem:[%s1490_s0 + $0xd0] sm:$0xff]  ;;  %v41_v2 = vld [vmem:[%s1490_s0 + $0xd8] sm:$0xff]  ;;  %v47_v3 = vld [vmem:[%s1490_s0 + $0x108] sm:$0xff] }
  0x32   :  { %385 = vmatmul.mubr.f32.gmra.mrb[6].mxu1 %v37_v9  ;;  %915 = vmatpush3.bf16.msra.mxu0 %v914_v8  ;;  %v48_v4 = vld [vmem:[%s1490_s0 + $0x110] sm:$0xff]  ;;  %v46_v5 = vld [vmem:[%s1490_s0 + $0x100] sm:$0xff]  ;;  %v55_v6 = vld [vmem:[%s1490_s0 + $0x148] sm:$0xff] }
  0x33   :  { %947 = vmatpush3.bf16.msra.mxu1 %v914_v8  ;;  %284 = vmatprep.mubr.f32.mxu0 %v43_v12  ;;  %v54_v7 = vld [vmem:[%s1490_s0 + $0x140] sm:$0xff]  ;;  %v53_v9 = vld [vmem:[%s1490_s0 + $0x138] sm:$0xff] }
  0x34   :  { %389 = vmatprep.mubr.f32.mxu1 %v45_v14  ;;  %917 = vmatprep.subr.bf16.mxu0 %v916_v13  ;;  %v62_v8 = vld [vmem:[%s1490_s0 + $0x180] sm:$0xff]  ;;  %v69_v10 = vld [vmem:[%s1490_s0 + $0x1b8] sm:$0xff] }
  0x35   :  { %285 = vmatmul.mubr.f32.gmra.mrb[8].mxu0 %v42_v17  ;;  %940 = vmatprep.subr.bf16.mxu1 %v916_v13  ;;  %v633_v12 = vld [vmem:[%s1491_s2] ss:$0 sm:$0xff] }
  0x36   :  { %390 = vmatmul.mubr.f32.gmra.mrb[8].mxu1 %v44_v19  ;;  %919 = vmatpush3.bf16.msra.mxu0 %v918_v18 }
  0x37   :  { %948 = vmatpush3.bf16.msra.mxu1 %v918_v18  ;;  %289 = vmatprep.mubr.f32.mxu0 %v50_v22 }
  0x38   :  { %394 = vmatprep.mubr.f32.mxu1 %v52_v24  ;;  %921 = vmatprep.subr.bf16.mxu0 %v920_v23 }
  0x39   :  { %290 = vmatmul.mubr.f32.gmra.mrb[10].mxu0 %v49_v27  ;;  %941 = vmatprep.subr.bf16.mxu1 %v920_v23 }
  0x3a   :  { %395 = vmatmul.mubr.f32.gmra.mrb[10].mxu1 %v51_v29  ;;  %923 = vmatpush3.bf16.msra.mxu0 %v922_v28 }
  0x3b   :  { %949 = vmatpush3.bf16.msra.mxu1 %v922_v28  ;;  %294 = vmatprep.mubr.f32.mxu0 %v57_v32 }
  0x3c   :  { %399 = vmatprep.mubr.f32.mxu1 %v59_v34  ;;  %925 = vmatprep.subr.bf16.mxu0 %v924_v33 }
  0x3d   :  { %295 = vmatmul.mubr.f32.gmra.mrb[12].mxu0 %v56_v37  ;;  %942 = vmatprep.subr.bf16.mxu1 %v924_v33 }
  0x3e   :  { %400 = vmatmul.mubr.f32.gmra.mrb[12].mxu1 %v58_v39  ;;  %927 = vmatpush3.bf16.msra.mxu0 %v926_v38 }
  0x3f   :  { %950 = vmatpush3.bf16.msra.mxu1 %v926_v38  ;;  %299 = vmatprep.mubr.f32.mxu0 %v64_v42 }
  0x40   :  { %404 = vmatprep.mubr.f32.mxu1 %v66_v44  ;;  %929 = vmatprep.subr.bf16.mxu0 %v928_v43 }
  0x41   :  { %300 = vmatmul.mubr.f32.gmra.mrb[14].mxu0 %v63_v47  ;;  %943 = vmatprep.subr.bf16.mxu1 %v928_v43 }
  0x42   :  { %405 = vmatmul.mubr.f32.gmra.mrb[14].mxu1 %v65_v49  ;;  %931 = vmatpush3.bf16.msra.mxu0 %v930_v48 }
  0x43   :  { %951 = vmatpush3.bf16.msra.mxu1 %v930_v48  ;;  %474 = vmatprep.mubr.f32.mxu0 %v19_v50 }
  0x44   :  { %504 = vmatprep.mubr.f32.mxu1 %v61_v52  ;;  %933 = vmatprep.subr.bf16.mxu1 %v932_v51 }
  0x45   :  { %475 = vmatmul.mubr.f32.vlgmr.msra.gmra.mrb[16].mxu0 %v18_v53 }
  0x46   :  { %505 = vmatmul.mubr.f32.vlgmr.msra.gmra.mrb[16].mxu1 %v60_v54  ;;  %479 = vmatprep.mubr.f32.mxu0 %v26_v55 }
  0x47   :  { %509 = vmatprep.mubr.f32.mxu1 %v68_v56  ;;  %935 = vmatpush3.bf16.msra.mxu1 %v932_v51 }
  0x49   :  { %480 = vmatmul.mubr.f32.gmra.mrb[18].mxu0 %v25_v57 }
  0x4a   :  { %510 = vmatmul.mubr.f32.gmra.mrb[18].mxu1 %v67_v58  ;;  %484 = vmatprep.mubr.f32.mxu0 %v33_v59 }
  0x4b   :  { %824 = vmatprep.mubr.msk.f32.mxu1 %vm175_vm0, %v20_v60 }
  0x4d   :  { %485 = vmatmul.mubr.f32.gmra.mrb[20].mxu0 %v32_v61 }
  0x4e   :  { %825 = vmatmul.mubr.msk.f32.vlgmr.msra.gmra.mrb[20].mxu1 %vm175_vm0, %v27_v62  ;;  %489 = vmatprep.mubr.f32.mxu0 %v40_v63 }
  0x4f   :  { %827 = vmatprep.mubr.msk.f32.mxu1 %vm175_vm0, %v34_v0 }
  0x51   :  { %490 = vmatmul.mubr.f32.gmra.mrb[22].mxu0 %v39_v1 }
  0x52   :  { %828 = vmatmul.mubr.msk.f32.gmra.mrb[22].mxu1 %vm175_vm0, %v41_v2  ;;  %494 = vmatprep.mubr.f32.mxu0 %v47_v3 }
  0x53   :  { %830 = vmatprep.mubr.msk.f32.mxu1 %vm175_vm0, %v48_v4 }
  0x55   :  { %495 = vmatmul.mubr.f32.gmra.mrb[24].mxu0 %v46_v5 }
  0x56   :  { %831 = vmatmul.mubr.msk.f32.gmra.mrb[24].mxu1 %vm175_vm0, %v55_v6  ;;  %499 = vmatprep.mubr.f32.mxu0 %v54_v7 }
  0x57   :  { %833 = vmatprep.mubr.msk.f32.mxu1 %vm175_vm0, %v62_v8 }
  0x59   :  { %500 = vmatmul.mubr.f32.gmra.mrb[26].mxu0 %v53_v9 }
  0x5a   :  { %834 = vmatmul.mubr.msk.f32.gmra.mrb[26].mxu1 %vm175_vm0, %v69_v10 }
  0xf8   :  { %v674_v11 = vpop.f32.mrb[0].mxu0 }
  0xf9   :  { %v675_v13 = vpop.f32.mrb[1].mxu0  ;;  %v730_v14 = vpop.f32.mrb[0].mxu1 }
  0xfa   :  { %v676_v15 = vadd.f32 %v675_v13, %v674_v11  ;;  %v731_v16 = vpop.f32.mrb[1].mxu1 }
  0xfb   :  { %v732_v17 = vadd.f32 %v731_v16, %v730_v14 }
  0xfc   :  { %v267_v18 = vadd.f32 %v676_v15, %v633_v12  ;;  %v677_v19 = vpop.f32.mrb[2].mxu0 }
  0xfd   :  { %v678_v20 = vpop.f32.mrb[3].mxu0  ;;  %v733_v21 = vpop.f32.mrb[2].mxu1 }
  0xfe   :  { %v372_v22 = vadd.f32 %v732_v17, %v267_v18  ;;  %v679_v23 = vadd.f32 %v678_v20, %v677_v19  ;;  %v734_v24 = vpop.f32.mrb[3].mxu1 }
  0xff   :  { %v735_v25 = vadd.f32 %v734_v24, %v733_v21 }
 0x100   :  { %v272_v26 = vadd.f32 %v679_v23, %v633_v12  ;;  %v680_v27 = vpop.f32.mrb[4].mxu0 }
 0x101   :  { %v681_v28 = vpop.f32.mrb[5].mxu0  ;;  %v736_v29 = vpop.f32.mrb[4].mxu1 }
 0x102   :  { %v377_v30 = vadd.f32 %v735_v25, %v272_v26  ;;  %v682_v31 = vadd.f32 %v681_v28, %v680_v27  ;;  %v737_v32 = vpop.f32.mrb[5].mxu1 }
 0x103   :  { %v738_v33 = vadd.f32 %v737_v32, %v736_v29 }
 0x104   :  { %v277_v34 = vadd.f32 %v682_v31, %v633_v12  ;;  %v683_v35 = vpop.f32.mrb[6].mxu0 }
 0x105   :  { %v684_v36 = vpop.f32.mrb[7].mxu0  ;;  %v739_v37 = vpop.f32.mrb[6].mxu1 }
 0x106   :  { %v1445_v38 = vadd.f32 %v738_v33, %v277_v34  ;;  %v685_v39 = vadd.f32 %v684_v36, %v683_v35  ;;  %v740_v40 = vpop.f32.mrb[7].mxu1 }
 0x107   :  { %v741_v41 = vadd.f32 %v740_v40, %v739_v37 }
 0x108   :  { %v282_v42 = vadd.f32 %v685_v39, %v633_v12  ;;  %v686_v43 = vpop.f32.mrb[8].mxu0 }
 0x109   :  { %v687_v44 = vpop.f32.mrb[9].mxu0  ;;  %v742_v45 = vpop.f32.mrb[8].mxu1 }
 0x10a   :  { %v1447_v46 = vadd.f32 %v741_v41, %v282_v42  ;;  %v688_v47 = vadd.f32 %v687_v44, %v686_v43  ;;  %v743_v48 = vpop.f32.mrb[9].mxu1 }
 0x10b   :  { %v744_v49 = vadd.f32 %v743_v48, %v742_v45 }
 0x10c   :  { %v287_v50 = vadd.f32 %v688_v47, %v633_v12  ;;  %v689_v51 = vpop.f32.mrb[10].mxu0 }
 0x10d   :  { %v690_v52 = vpop.f32.mrb[11].mxu0  ;;  %v745_v53 = vpop.f32.mrb[10].mxu1 }
 0x10e   :  { %v1449_v54 = vadd.f32 %v744_v49, %v287_v50  ;;  %v691_v55 = vadd.f32 %v690_v52, %v689_v51  ;;  %v746_v56 = vpop.f32.mrb[11].mxu1 }
 0x10f   :  { %v747_v57 = vadd.f32 %v746_v56, %v745_v53 }
 0x110   :  { %v292_v58 = vadd.f32 %v691_v55, %v633_v12  ;;  %v692_v59 = vpop.f32.mrb[12].mxu0 }
 0x111   :  { %v693_v60 = vpop.f32.mrb[13].mxu0  ;;  %v748_v61 = vpop.f32.mrb[12].mxu1 }
 0x112   :  { %v1451_v62 = vadd.f32 %v747_v57, %v292_v58  ;;  %v694_v63 = vadd.f32 %v693_v60, %v692_v59  ;;  %v749_v0 = vpop.f32.mrb[13].mxu1 }
 0x113   :  { %v750_v1 = vadd.f32 %v749_v0, %v748_v61 }
 0x114   :  { %v297_v2 = vadd.f32 %v694_v63, %v633_v12  ;;  %v695_v3 = vpop.f32.mrb[14].mxu0 }
 0x115   :  { %v696_v4 = vpop.f32.mrb[15].mxu0  ;;  %v751_v5 = vpop.f32.mrb[14].mxu1 }
 0x116   :  { %v402_v6 = vadd.f32 %v750_v1, %v297_v2  ;;  %v697_v7 = vadd.f32 %v696_v4, %v695_v3  ;;  %v752_v8 = vpop.f32.mrb[15].mxu1 }
 0x117   :  { %v753_v9 = vadd.f32 %v752_v8, %v751_v5 }
 0x118   :  { %v302_v10 = vadd.f32 %v697_v7, %v633_v12  ;;  %v786_v11 = vpop.f32.mrb[16].mxu0 }
 0x119   :  { %v804_v13 = vpop.f32.mrb[16].mxu1  ;;  %v787_v14 = vpop.f32.mrb[17].mxu0 }
 0x11a   :  { %v407_v15 = vadd.f32 %v753_v9, %v302_v10  ;;  %v788_v16 = vadd.f32 %v787_v14, %v786_v11  ;;  %v805_v17 = vpop.f32.mrb[17].mxu1 }
 0x11b   :  { %v806_v18 = vadd.f32 %v805_v17, %v804_v13 }
 0x11c   :  { %v789_v19 = vpop.f32.mrb[18].mxu0  ;;  %v477_v20 = vadd.f32 %v788_v16, %v372_v22 }
 0x11d   :  { %v807_v21 = vpop.f32.mrb[18].mxu1  ;;  %v790_v23 = vpop.f32.mrb[19].mxu0  ;;  %v507_v24 = vadd.f32 %v806_v18, %v402_v6 }
 0x11e   :  { %v791_v25 = vadd.f32 %v790_v23, %v789_v19  ;;  %v808_v26 = vpop.f32.mrb[19].mxu1 }
 0x11f   :  { %v809_v27 = vadd.f32 %v808_v26, %v807_v21 }
 0x120   :  { %v792_v28 = vpop.f32.mrb[20].mxu0  ;;  %v482_v29 = vadd.f32 %v791_v25, %v377_v30 }
 0x121   :  { %v826_v31 = vpop.f32.mrb[20].mxu1  ;;  %v793_v12 = vpop.f32.mrb[21].mxu0  ;;  %v512_v32 = vadd.f32 %v809_v27, %v407_v15 }
 0x122   :  { %v587_v33 = vadd.f32 %v826_v31, %v482_v29  ;;  %v794_v34 = vadd.f32 %v793_v12, %v792_v28  ;;  %v581_v35 = vpop.f32.mrb[21].mxu1 }
 0x123   :  { %v582_v36 = vadd.f32 %v581_v35, %v477_v20 }
 0x124   :  { %622 = vst.msk [vmem:[%s1492_s3 + $0x8] sm:$0xff] %vm620_vm1, %v587_v33  ;;  %v795_v22 = vpop.f32.mrb[22].mxu0  ;;  %v487_v37 = vadd.f32 %v794_v34, %v1445_v38 }
 0x125   :  { %621 = vst.msk [vmem:[%s1492_s3] sm:$0xff] %vm620_vm1, %v582_v36  ;;  %v829_v30 = vpop.f32.mrb[22].mxu1  ;;  %v796_v39 = vpop.f32.mrb[23].mxu0 }
 0x126   :  { %v797_v40 = vadd.f32 %v796_v39, %v795_v22  ;;  %v591_v41 = vpop.f32.mrb[23].mxu1 }
 0x127   :  { %v592_v42 = vadd.f32 %v591_v41, %v487_v37 }
 0x128   :  { %v492_v43 = vadd.f32 %v797_v40, %v1447_v46  ;;  %v798_v44 = vpop.f32.mrb[24].mxu0 }
 0x129   :  { %623 = vst.msk [vmem:[%s1492_s3 + $0x10] sm:$0xff] %vm620_vm1, %v592_v42  ;;  %v799_v45 = vpop.f32.mrb[25].mxu0  ;;  %v832_v38 = vpop.f32.mrb[24].mxu1 }
 0x12a   :  { %v597_v47 = vadd.f32 %v829_v30, %v492_v43  ;;  %v800_v48 = vadd.f32 %v799_v45, %v798_v44  ;;  %v601_v49 = vpop.f32.mrb[25].mxu1 }
 0x12c   :  { %624 = vst.msk [vmem:[%s1492_s3 + $0x18] sm:$0xff] %vm620_vm1, %v597_v47  ;;  %v497_v50 = vadd.f32 %v800_v48, %v1449_v54  ;;  %v801_v51 = vpop.f32.mrb[26].mxu0 }
 0x12d   :  { %v835_v46 = vpop.f32.mrb[26].mxu1  ;;  %v802_v52 = vpop.f32.mrb[27].mxu0 }
 0x12e   :  { %v602_v53 = vadd.f32 %v601_v49, %v497_v50  ;;  %v617_v55 = vadd.f32 %v835_v46, %v512_v32  ;;  %v803_v56 = vadd.f32 %v802_v52, %v801_v51  ;;  %v611_v57 = vpop.f32.mrb[27].mxu1 }
 0x12f   :  { %v612_v58 = vadd.f32 %v611_v57, %v507_v24 }
 0x130   :  { %625 = vst.msk [vmem:[%s1492_s3 + $0x20] sm:$0xff] %vm620_vm1, %v602_v53  ;;  %628 = vst.msk [vmem:[%s1492_s3 + $0x38] sm:$0xff] %vm620_vm1, %v617_v55  ;;  %v502_v54 = vadd.f32 %v803_v56, %v1451_v62 }
 0x131   :  { %627 = vst.msk [vmem:[%s1492_s3 + $0x30] sm:$0xff] %vm620_vm1, %v612_v58 }
 0x132   :  { %v607_v59 = vadd.f32 %v832_v38, %v502_v54 }
 0x134   :  { %626 = vst.msk [vmem:[%s1492_s3 + $0x28] sm:$0xff] %vm620_vm1, %v607_v59 }

</bundles_post_ra>
